<compile_context>
chip_gen: v7x
topology: tpu7x:2x2x1
jax: 0.10.0
libtpu: 0.0.40
codegen_flags: <defaults>
</compile_context>

<pallas_src>
import jax
import jax.numpy as jnp
from jax.experimental import pallas as pl
from jax.experimental.pallas import tpu as pltpu


def _round_up(x, m):
    return ((x + m - 1) // m) * m


def _vmem_budget_bytes():
    """~75% of physical per-core VMEM (falls back to the v7x 64 MiB floor)."""
    try:
        phys = int(getattr(pltpu.get_tpu_info(), "vmem_capacity_bytes", 64 << 20))
    except Exception:
        phys = 64 << 20
    return phys * 3 // 4


def pack_resnet_block1_params(weight, bias, param_dtype=None):
    """Pack torch-convention Linear params once (hoisted out of the forward).

    weight: (out_dim, in_dim), bias: (out_dim,).
    Returns (W_packed (in_dim, Dp), b_packed (1, Dp) f32, in_dim, out_dim)
    with Dp = roundup(max(in_dim, out_dim), 128).  The module's residual add
    and both constant-1 F.pad cases are folded in:
      * +identity on W's diagonal            (residual x),
      * bias  = 1.0 on cols [out_dim, in_dim) (in > out: fc output padded w/ 1),
      * bias += 1.0 on cols [in_dim, out_dim) (in < out: residual padded w/ 1).
    """
    out_dim, in_dim = weight.shape
    d_pad = _round_up(max(in_dim, out_dim), 128)
    w_dtype = jnp.dtype(param_dtype) if param_dtype is not None else weight.dtype

    w = jnp.zeros((in_dim, d_pad), jnp.float32)
    w = w.at[:, :out_dim].set(weight.T.astype(jnp.float32))
    w = w + jnp.eye(in_dim, d_pad, dtype=jnp.float32)   # fold residual identity
    w = w.astype(w_dtype)

    b = jnp.zeros((d_pad,), jnp.float32)
    b = b.at[:out_dim].set(bias.astype(jnp.float32))
    if in_dim > out_dim:
        b = b.at[out_dim:in_dim].set(1.0)
    elif in_dim < out_dim:
        b = b.at[in_dim:out_dim].add(1.0)
    return w, b.reshape(1, d_pad), in_dim, out_dim


def _make_kernel(activation):
    def kernel(x_ref, w_ref, b_ref, o_ref):
        acc = jnp.dot(x_ref[...], w_ref[...],
                      preferred_element_type=jnp.float32)       # (TB, Dp) on MXU
        o_ref[...] = activation(acc + b_ref[...]).astype(o_ref.dtype)
    return kernel


def _choose_tb(batch, in_dim, d_pad, itemsize, resident_bytes, budget, block_batch):
    row_mult = 16 if itemsize == 2 else 8            # bf16 vreg is [16, 128]
    target = 1024 if block_batch is None else block_batch
    tb = _round_up(max(1, min(target, batch)), row_mult)
    # Keep >= 2 grid steps when batch allows -> both v7x TensorCores get work.
    while tb > row_mult and pl.cdiv(batch, tb) < 2:
        tb = _round_up(tb // 2, row_mult)
    # Shrink until double-buffered x/out tiles + resident params fit VMEM.
    def vmem_need(t):
        return 2 * t * (in_dim + d_pad) * itemsize + resident_bytes
    while tb > row_mult and vmem_need(tb) > budget:
        tb = _round_up(tb // 2, row_mult)
    return tb


def resnet_block1_forward(x, packed, *, block_batch=None, activation=None):
    """x: (batch, in_dim). Returns (batch, max(in_dim, out_dim))."""
    if activation is None:
        activation = lambda v: jnp.maximum(v, 0.0)   # ReLU (module default)
    w, b2, in_dim, out_dim = packed
    batch, k = x.shape
    assert k == in_dim, (k, in_dim)
    d_pad = w.shape[1]
    d = max(in_dim, out_dim)

    itemsize = jnp.dtype(x.dtype).itemsize
    w_bytes = w.size * jnp.dtype(w.dtype).itemsize
    b_bytes = b2.size * 4
    budget = _vmem_budget_bytes()
    tb = _choose_tb(batch, in_dim, d_pad, itemsize, w_bytes + b_bytes,
                    budget, block_batch)
    grid = (pl.cdiv(batch, tb),)

    vmem_need = 2 * tb * (in_dim + d_pad) * itemsize + w_bytes + b_bytes
    vmem_limit = int(min(budget, max(32 << 20, int(vmem_need * 1.3) + (2 << 20))))

    cost = pl.CostEstimate(
        flops=2 * batch * in_dim * d_pad,
        transcendentals=0,
        bytes_accessed=(batch * in_dim * itemsize + w_bytes + b_bytes
                        + batch * d_pad * itemsize))

    kernel = _make_kernel(activation)

    def call(single_buffer_params):
        # Constant index_map -> params never re-DMA; Buffered(1) drops their
        # second pipeline buffer (the big VMEM lever for a resident weight).
        pm = dict(pipeline_mode=pl.Buffered(1)) if single_buffer_params else {}
        return pl.pallas_call(
            kernel,
            out_shape=jax.ShapeDtypeStruct((batch, d_pad), x.dtype),
            grid=grid,
            in_specs=[
                pl.BlockSpec((tb, in_dim), lambda i: (i, 0)),            # x stream
                pl.BlockSpec((in_dim, d_pad), lambda i: (0, 0), **pm),   # resident W
                pl.BlockSpec((1, d_pad), lambda i: (0, 0), **pm),        # resident b
            ],
            out_specs=pl.BlockSpec((tb, d_pad), lambda i: (i, 0)),
            compiler_params=pltpu.CompilerParams(
                dimension_semantics=("parallel",),
                vmem_limit_bytes=vmem_limit),
            cost_estimate=cost,
        )(x, w, b2)

    try:
        out = call(True)
    except Exception:       # pl.Buffered(1) not accepted on this jax build
        out = call(False)

    # Lane padding only; batch rows are exact (grid = cdiv, no row padding).
    return out if d == d_pad else out[:, :d]


def _reference(x, weight, bias):
    # Pure-JAX replica of the PyTorch forward for verification.
    y = x @ weight.T + bias
    in_dim, out_dim = x.shape[1], y.shape[1]
    if in_dim > out_dim:
        y = jnp.pad(y, ((0, 0), (0, in_dim - out_dim)), constant_values=1.0)
        res = x
    elif in_dim < out_dim:
        res = jnp.pad(x, ((0, 0), (0, out_dim - in_dim)), constant_values=1.0)
    else:
        res = x
    return jnp.maximum(y + res, 0.0)


if __name__ == "__main__":
    key = jax.random.PRNGKey(0)

    cases = [
        (64, 32, 48),    # in < out  (residual padded with 1)
        (64, 48, 32),    # in > out  (fc output padded with 1)
        (64, 40, 40),    # in == out
        (64, 32, 200),   # in < out, Dp spans two 128-lane groups
        (64, 200, 32),   # in > out, unaligned in_dim streamed unpadded
        (30, 48, 48),    # batch not a multiple of the tile -> cdiv boundary
    ]

    for (batch, in_dim, out_dim) in cases:
        key, k1, k2, k3 = jax.random.split(key, 4)
        x = jax.random.normal(k1, (batch, in_dim), dtype=jnp.float32)
        weight = jax.random.normal(k2, (out_dim, in_dim), dtype=jnp.float32) * 0.1
        bias = jax.random.normal(k3, (out_dim,), dtype=jnp.float32) * 0.1

        packed = pack_resnet_block1_params(weight, bias)        # pre-pack once
        out = jax.block_until_ready(resnet_block1_forward(x, packed))

        ref = _reference(x, weight, bias)
        assert out.shape == ref.shape, (out.shape, ref.shape)
        assert jnp.allclose(out, ref, atol=1e-4, rtol=1e-4), \
            f"f32 mismatch for shape {(batch, in_dim, out_dim)}"

    # bf16 x/W path (valid on v5e/v6e/v7x MXUs; accumulation stays f32).
    batch, in_dim, out_dim = 64, 32, 48
    key, k1, k2, k3 = jax.random.split(key, 4)
    x = jax.random.normal(k1, (batch, in_dim), dtype=jnp.float32)
    weight = jax.random.normal(k2, (out_dim, in_dim), dtype=jnp.float32) * 0.1
    bias = jax.random.normal(k3, (out_dim,), dtype=jnp.float32) * 0.1
    packed_bf16 = pack_resnet_block1_params(weight, bias, param_dtype=jnp.bfloat16)
    out_bf16 = jax.block_until_ready(
        resnet_block1_forward(x.astype(jnp.bfloat16), packed_bf16))
    ref = _reference(x, weight, bias)
    assert jnp.allclose(out_bf16.astype(jnp.float32), ref, atol=0.1, rtol=0.1), \
        "bf16 path mismatch"

    print("KERNEL_OK")
</pallas_src>

<mosaic_0001>
module attributes {stable_mosaic.version = 11 : i64} {
  func.func @kernel(%arg0: i32, %arg1: memref<32x32xf32, #tpu.memory_space<vmem>>, %arg2: memref<32x128xf32, #tpu.memory_space<vmem>>, %arg3: memref<1x128xf32, #tpu.memory_space<vmem>>, %arg4: memref<32x128xf32, #tpu.memory_space<vmem>>) attributes {dimension_semantics = [#tpu.dimension_semantics<parallel>], iteration_bounds = array<i64: 2>, scalar_prefetch = 0 : i64, scratch_operands = 0 : i64, tpu.core_type = #tpu.core_type<tc>, window_params = [{transform_indices = @transform_0, window_bounds = array<i64: 32, 32>}, {pipeline_mode = #tpu.pipeline_mode<synchronous>, transform_indices = @transform_1, window_bounds = array<i64: 32, 128>}, {pipeline_mode = #tpu.pipeline_mode<synchronous>, transform_indices = @transform_2, window_bounds = array<i64: 1, 128>}, {transform_indices = @transform_3, window_bounds = array<i64: 32, 128>}]} {
    %c0 = arith.constant 0 : index
    %c0_0 = arith.constant 0 : index
    %0 = vector.load %arg1[%c0, %c0_0] : memref<32x32xf32, #tpu.memory_space<vmem>>, vector<32x32xf32>
    %c0_1 = arith.constant 0 : index
    %c0_2 = arith.constant 0 : index
    %1 = vector.load %arg2[%c0_1, %c0_2] : memref<32x128xf32, #tpu.memory_space<vmem>>, vector<32x128xf32>
    %cst = arith.constant dense<0.000000e+00> : vector<32x128xf32>
    %2 = tpu.matmul %0, %1, %cst {dimension_numbers = #tpu.dot_dimension_numbers<[1], [0], [0], [1], [0, 0, 1, 1], [], []>} : vector<32x32xf32>, vector<32x128xf32>, vector<32x128xf32> -> vector<32x128xf32>
    %c0_3 = arith.constant 0 : index
    %c0_4 = arith.constant 0 : index
    %3 = vector.load %arg3[%c0_3, %c0_4] : memref<1x128xf32, #tpu.memory_space<vmem>>, vector<1x128xf32>
    %4 = vector.broadcast %3 : vector<1x128xf32> to vector<32x128xf32>
    %5 = arith.addf %2, %4 : vector<32x128xf32>
    %cst_5 = arith.constant 0.000000e+00 : f32
    %6 = vector.broadcast %cst_5 : f32 to vector<32x128xf32>
    %7 = arith.maximumf %5, %6 : vector<32x128xf32>
    %c0_6 = arith.constant 0 : index
    %c0_7 = arith.constant 0 : index
    %8 = vector.load %arg4[%c0_6, %c0_7] : memref<32x128xf32, #tpu.memory_space<vmem>>, vector<32x128xf32>
    tpu.vector_store %arg4[%c0_6, %c0_7], %7 {strides = array<i32>} : memref<32x128xf32, #tpu.memory_space<vmem>>, vector<32x128xf32>,
    return
  }
  func.func @transform_0(%arg0: i32) -> (i32, i32) {
    %c0_i32 = arith.constant 0 : i32
    %c0_i32_0 = arith.constant 0 : i32
    return %arg0, %c0_i32 : i32, i32
  }
  func.func @transform_1(%arg0: i32) -> (i32, i32) {
    %c0_i32 = arith.constant 0 : i32
    %c0_i32_0 = arith.constant 0 : i32
    %c0_i32_1 = arith.constant 0 : i32
    return %c0_i32, %c0_i32_0 : i32, i32
  }
  func.func @transform_2(%arg0: i32) -> (i32, i32) {
    %c0_i32 = arith.constant 0 : i32
    %c0_i32_0 = arith.constant 0 : i32
    %c0_i32_1 = arith.constant 0 : i32
    return %c0_i32, %c0_i32_0 : i32, i32
  }
  func.func @transform_3(%arg0: i32) -> (i32, i32) {
    %c0_i32 = arith.constant 0 : i32
    %c0_i32_0 = arith.constant 0 : i32
    return %arg0, %c0_i32 : i32, i32
  }
}

module attributes {stable_mosaic.version = 11 : i64} {
  func.func @kernel(%arg0: i32, %arg1: memref<32x32xf32, #tpu.memory_space<vmem>>, %arg2: memref<32x128xf32, #tpu.memory_space<vmem>>, %arg3: memref<1x128xf32, #tpu.memory_space<vmem>>, %arg4: memref<32x128xf32, #tpu.memory_space<vmem>>) attributes {dimension_semantics = [#tpu.dimension_semantics<parallel>], iteration_bounds = array<i64: 2>, scalar_prefetch = 0 : i64, scratch_operands = 0 : i64, tpu.core_type = #tpu.core_type<tc>, window_params = [{transform_indices = @transform_0, window_bounds = array<i64: 32, 32>}, {pipeline_mode = #tpu.pipeline_mode<synchronous>, transform_indices = @transform_1, window_bounds = array<i64: 32, 128>}, {pipeline_mode = #tpu.pipeline_mode<synchronous>, transform_indices = @transform_2, window_bounds = array<i64: 1, 128>}, {transform_indices = @transform_3, window_bounds = array<i64: 32, 128>}]} {
    %c0 = arith.constant 0 : index
    %c0_0 = arith.constant 0 : index
    %0 = vector.load %arg1[%c0, %c0_0] : memref<32x32xf32, #tpu.memory_space<vmem>>, vector<32x32xf32>
    %c0_1 = arith.constant 0 : index
    %c0_2 = arith.constant 0 : index
    %1 = vector.load %arg2[%c0_1, %c0_2] : memref<32x128xf32, #tpu.memory_space<vmem>>, vector<32x128xf32>
    %cst = arith.constant dense<0.000000e+00> : vector<32x128xf32>
    %2 = tpu.matmul %0, %1, %cst {dimension_numbers = #tpu.dot_dimension_numbers<[1], [0], [0], [1], [0, 0, 1, 1], [], []>} : vector<32x32xf32>, vector<32x128xf32>, vector<32x128xf32> -> vector<32x128xf32>
    %c0_3 = arith.constant 0 : index
    %c0_4 = arith.constant 0 : index
    %3 = vector.load %arg3[%c0_3, %c0_4] : memref<1x128xf32, #tpu.memory_space<vmem>>, vector<1x128xf32>
    %4 = vector.broadcast %3 : vector<1x128xf32> to vector<32x128xf32>
    %5 = arith.addf %2, %4 : vector<32x128xf32>
    %cst_5 = arith.constant 0.000000e+00 : f32
    %6 = vector.broadcast %cst_5 : f32 to vector<32x128xf32>
    %7 = arith.maximumf %5, %6 : vector<32x128xf32>
    %c0_6 = arith.constant 0 : index
    %c0_7 = arith.constant 0 : index
    %8 = vector.load %arg4[%c0_6, %c0_7] : memref<32x128xf32, #tpu.memory_space<vmem>>, vector<32x128xf32>
    tpu.vector_store %arg4[%c0_6, %c0_7], %7 {strides = array<i32>} : memref<32x128xf32, #tpu.memory_space<vmem>>, vector<32x128xf32>,
    return
  }
  func.func @transform_0(%arg0: i32) -> (i32, i32) {
    %c0_i32 = arith.constant 0 : i32
    %c0_i32_0 = arith.constant 0 : i32
    return %arg0, %c0_i32 : i32, i32
  }
  func.func @transform_1(%arg0: i32) -> (i32, i32) {
    %c0_i32 = arith.constant 0 : i32
    %c0_i32_0 = arith.constant 0 : i32
    %c0_i32_1 = arith.constant 0 : i32
    return %c0_i32, %c0_i32_0 : i32, i32
  }
  func.func @transform_2(%arg0: i32) -> (i32, i32) {
    %c0_i32 = arith.constant 0 : i32
    %c0_i32_0 = arith.constant 0 : i32
    %c0_i32_1 = arith.constant 0 : i32
    return %c0_i32, %c0_i32_0 : i32, i32
  }
  func.func @transform_3(%arg0: i32) -> (i32, i32) {
    %c0_i32 = arith.constant 0 : i32
    %c0_i32_0 = arith.constant 0 : i32
    return %arg0, %c0_i32 : i32, i32
  }
}

</mosaic_0001>

<bundles_post_ra>
// kernel: tpu_custom_call.1
= control target key start
LH: loop header
LB: loop body
LE: loop exit
PB: predicated region body
PF: predicated region fallthrough
CT: control target
= control target key end

     0   :  { %8 = vsyncpa [#allocation3], 0  ;;  %s666_s0 = inlined_call_operand.vmem [shape: f32[64,32], index: 0, kind: input, shape index: {}]   ;;  %s667_s1 = inlined_call_operand.vmem [shape: f32[32,128], index: 1, kind: input, shape index: {}]   ;;  %s668_s2 = inlined_call_operand.vmem [shape: f32[1,128], index: 2, kind: input, shape index: {}]   ;;  %s669_s3 = inlined_call_operand.hbm [shape: f32[64,128], index: 3, kind: output, shape index: {}]  }
   0x1   :  { %10 = vsyncpa [#allocation3 + $0x1], 0  ;;  %s549_s12 = smov 0   ;;  %s551_s13 = smov 0  }
   0x2   :  { %s553_s14 = smov 0   ;;  %s555_s15 = smov 0  }
   0x3 LB: > { %s570_s16 = sadd.s32 4294967295, %s524_s15   ;;  %s369_s17 = sadd.s32 4294967294, %s524_s15   ;;  %s524_s15 = sphi %s555_s15, %s675_s15   ;;  %s520_s14 = sphi %s553_s14, %s674_s14   ;;  %s516_s13 = sphi %s551_s13, %s673_s13   ;;  %s512_s12 = sphi %s549_s12, %s672_s12  }
   0x4   : > { %s574_s18 = sadd.s32 1, %s524_s15   ;;  %s91_s19 = sadd.s32 1, %s520_s14 }
   0x5   : > { %s88_s20 = ssub.s32 %s524_s15, %s574_s18  ;;  %p101_p0 = scmp.ne.s32.totalorder %s520_s14, %s516_s13 }
   0x6   : > { %p89_p1 = scmp.eq.s32.totalorder %s88_s20, 0  ;;  %p102_p2 = scmp.eq.s32.totalorder %s570_s16, 1 }
   0x7   : > { %p107_p3 = scmp.ne.s32.totalorder %s516_s13, %s512_s12  ;;  %p108_p4 = scmp.eq.s32.totalorder %s369_s17, 1 }
   0x8   : > { %s585_s21 = scalar_select %p89_p1, %s520_s14, %s91_s19  }
   0x9   : > { %p587_p5 = por %p102_p2, %p101_p0  ;;  %p591_p6 = por %p108_p4, %p107_p3 }
   0xa   : > { %p372_p7 = scmp.ge.s32.totalorder %s524_s15, 1  ;;  %p141_p8 = scmp.lt.s32.totalorder %s524_s15, 3 }
   0xc   : > { %p142_p9 = pnand %p372_p7, %p141_p8 }
   0xd   : > { %v176_v0 = vld [vmem:[%s667_s1] sm:$0xff] (!%p142_p9)  ;;  %v177_v1 = vld [vmem:[%s667_s1 + $0x8] sm:$0xff] (!%p142_p9)  ;;  %v178_v2 = vld [vmem:[%s667_s1 + $0x10] sm:$0xff] (!%p142_p9)  ;;  %s374_s30 = sshll.u32 (!%p142_p9), %s570_s16, 2  ;;  %vm187_vm0 = vcmask (!%p142_p9), 261120   ;;  %s162_s10 = sand.u32 (!%p142_p9), 1, %s516_s13  }
   0xe   : > { %145 = sbr.rel (%p142_p9) target bundleno = 258 (0x102), region = 32  ;;  %v409_v3 = vpack.c.bf16 (!%p142_p9), %v177_v1, %v176_v0  ;;  %v179_v4 = vld [vmem:[%s667_s1 + $0x18] sm:$0xff] (!%p142_p9)  ;;  %p166_p10 = scmp.lt.s32.totalorder (!%p142_p9), %s374_s30, 7  ;;  %v376_v10 = vld [vmem:[%s668_s2] ss:$0 sm:$0xff] (!%p142_p9) }
   0xf   : > { %v413_v5 = vpack.c.bf16 (!%p142_p9), %v179_v4, %v178_v2  ;;  %s373_s11 = sshll.u32 (!%p142_p9), %s162_s10, 5  ;;  %s386_s25 = sshll.u32 (!%p142_p9), %s570_s16, 9 }
  0x10   : > { %410 = vmatprep.subr.bf16.mxu0 (!%p142_p9), %v409_v3  ;;  %417 = vmatprep.subr.bf16.mxu1 (!%p142_p9), %v409_v3  ;;  %s164_s20 = scalar_lea.vmem (!%p142_p9), [#allocation2], %s373_s11  ;;  %s623_s28 = scalar_lea.hbm (!%p142_p9), %s669_s3, %s386_s25 }
  0x11   : > { %412 = vmatpush3.bf16.msra.mxu0 (!%p142_p9), %v409_v3  ;;  %419 = vmatpush3.bf16.msra.mxu1 (!%p142_p9), %v409_v3  ;;  %s307_s24 = sshll.u32 (!%p142_p9), %s164_s20, 4  ;;  %s625_s16 = scalar_lea.sflag (!%p142_p9), [#allocation3], %s162_s10  ;;  %s618_s24 = int_to_ptr.vmem [resolvable:$true] %s307_s24 }
  0x12   : > { %414 = vmatprep.subr.bf16.mxu0 (!%p142_p9), %v413_v5  ;;  %418 = vmatprep.subr.bf16.mxu1 (!%p142_p9), %v413_v5  ;;  %s462_s29 = scalar_lea.vmem (!%p142_p9), %s618_s24, 512 }
  0x13   : > { %p463_p11 = scmp.ne.s32.totalorder (!%p142_p9), %s618_s24, %s462_s29 }
  0x15   : > { %s677_s30 = smov (!%p166_p10, %s374_s30), 7  ;;  %416 = vmatpush3.bf16.msra.mxu0 %v413_v5  ;;  %420 = vmatpush3.bf16.msra.mxu1 %v413_v5  ;;  %p464_p12 = pnand %p463_p11, %p587_p5 }
  0x16   : > { %s375_s6 = sshll.u32 %s677_s30, 3  ;;  %s526_s30 = smov [#allocation2]  }
  0x17   : > { %s169_s9 = scalar_lea.vmem %s666_s0, %s375_s6  ;;  %p465_p13 = pneg %p464_p12 }
  0x18   : > { %v172_v6 = vld [vmem:[%s169_s9] sm:$0xff]  ;;  %v174_v7 = vld [vmem:[%s169_s9 + $0x10] sm:$0xff]  ;;  %v173_v8 = vld [vmem:[%s169_s9 + $0x8] sm:$0xff]  ;;  %s466_s4 = sshll.u32 %s526_s30, 4  ;;  %s467_s4 = int_to_ptr.vmem [resolvable:$false] %s466_s4 }
  0x19   : > { %v175_v9 = vld [vmem:[%s169_s9 + $0x18] sm:$0xff]  ;;  %403 = vmatprep.mubr.msk.f32.mxu0 %vm187_vm0, %v172_v6  ;;  %406 = vmatprep.mubr.msk.f32.mxu1 %vm187_vm0, %v174_v7  ;;  %s468_s5 = scalar_lea.vmem %s467_s4, 1024  ;;  %p469_p0 = scmp.lt.s32.totalorder %s618_s24, %s467_s4 }
  0x1a   : > { %404 = vmatmul.mubr.msk.f32.vlgmr.msra.gmra.mrb[0].mxu0 %vm187_vm0, %v173_v8  ;;  %407 = vmatmul.mubr.msk.f32.vlgmr.msra.gmra.mrb[0].mxu1 %vm187_vm0, %v175_v9  ;;  %p470_p1 = scmp.lt.s32.totalorder %s468_s5, %s462_s29 }
  0x1c   : > { %p471_p2 = por %p470_p1, %p469_p0 }
  0x1e   : > { %p472_p3 = pnand %p471_p2, %p465_p13 }
  0xed   : > { %v405_v11 = vpop.f32.mrb[0].mxu0  ;;  %v408_v12 = vpop.f32.mrb[0].mxu1 }
  0xee   : > { %v272_v13 = vadd.f32 %v405_v11, %v376_v10  ;;  %v282_v14 = vadd.f32 %v408_v12, %v376_v10  ;;  %v266_v15 = vpop.f32.mrb[1].mxu0  ;;  %v276_v16 = vpop.f32.mrb[1].mxu1 }
  0xef   : > { %v267_v17 = vadd.f32 %v376_v10, %v266_v15  ;;  %v277_v18 = vadd.f32 %v376_v10, %v276_v16 }
  0xf0   : > { %v286_v19 = vmax.f32 %v272_v13, 0.0  ;;  %v288_v20 = vmax.f32 %v282_v14, 0.0 }
  0xf1   : > { %v285_v21 = vmax.f32 %v267_v17, 0.0  ;;  %v287_v22 = vmax.f32 %v277_v18, 0.0 }
  0xf2   : > { %290 = vst [vmem:[%s164_s20 + $0x8] sm:$0xff] %v286_v19  ;;  %292 = vst [vmem:[%s164_s20 + $0x18] sm:$0xff] %v288_v20 }
  0xf3   : > { %289 = vst [vmem:[%s164_s20] sm:$0xff] %v285_v21  ;;  %291 = vst [vmem:[%s164_s20 + $0x10] sm:$0xff] %v287_v22 }
  0xf4   : > { %475 = shalt.err (!%p472_p3)
}
  0xf5   : > { %s476_s6 = scalar_lea.hbm %s623_s28, 512  ;;  %s480_s9 = scalar_lea.hbm %s669_s3, 1024 }
  0xf6   : > { %p477_p4 = scmp.ne.s32.totalorder %s623_s28, %s476_s6  ;;  %p481_p9 = scmp.lt.u32.totalorder %s623_s28, %s669_s3 }
  0xf7   : > { %p482_p10 = scmp.lt.u32.totalorder %s480_s9, %s476_s6  ;;  %p484_p12 = scmp.lt.u32.totalorder %s476_s6, %s623_s28 }
  0xf8   : > { %p478_p7 = pnand %p477_p4, %p587_p5 }
  0xf9   : > { %p483_p11 = por %p482_p10, %p481_p9 }
  0xfa   : > { %p479_p8 = pneg %p478_p7 }
  0xfb   : > { %p485_p13 = por %p484_p12, %p483_p11 }
  0xfd   : > { %p486_p0 = pnand %p485_p13, %p479_p8 }
  0xff   : > { %489 = shalt.err (!%p486_p0)
}
 0x100   : > { %s527_s17 = smov 128   ;;  %s528_s19 = smov 8  }
 0x101   : > { %421 = dma.vmem_to_hbm [thread:$0]  (%p587_p5), %s618_s24, 512, %s623_s28, %s625_s16, %s527_s17, %s527_s17, %s528_s19  }
 0x102 PF: > { %p427_p1 = scmp.ge.s32.totalorder %s524_s15, 2  ;;  %s322_s20 = sand.u32 1, %s512_s12  }
 0x103   : > { %s323_s25 = scalar_lea.sflag [#allocation3], %s322_s20 }
 0x104   : > { %p424_p2 = pnand %p427_p1, %p591_p6 }
 0x106   : > { %507 = dma.done.wait (!%p424_p2), %s323_s25, 512  }
 0x107   : > { %509 = vsyncadd (!%p424_p2), %s323_s25, 4294966784  ;;  %p13_p3 = scmp.ge.s32.totalorder %s574_s18, 4   ;;  %s672_s12 = smov %s516_s13 }
 0x108   : > { %s673_s13 = smov %s520_s14  ;;  %s674_s14 = smov %s585_s21 }
 0x109   : > { %s675_s15 = smov %s574_s18  ;;  %15 = sbr.rel (!%p13_p3) target bundleno = 3 (0x3), region = 67 }
 0x110   :  { %328 = vsyncpa [#allocation3], 1 }
 0x111   :  { %330 = vsyncpa [#allocation3 + $0x1], 1 }

// kernel: tpu_custom_call.1
= control target key start
LH: loop header
LB: loop body
LE: loop exit
PB: predicated region body
PF: predicated region fallthrough
CT: control target
= control target key end

     0   :  { %8 = vsyncpa [#allocation3], 0  ;;  %s666_s0 = inlined_call_operand.vmem [shape: f32[64,32], index: 0, kind: input, shape index: {}]   ;;  %s667_s1 = inlined_call_operand.vmem [shape: f32[32,128], index: 1, kind: input, shape index: {}]   ;;  %s668_s2 = inlined_call_operand.vmem [shape: f32[1,128], index: 2, kind: input, shape index: {}]   ;;  %s669_s3 = inlined_call_operand.hbm [shape: f32[64,128], index: 3, kind: output, shape index: {}]  }
   0x1   :  { %10 = vsyncpa [#allocation3 + $0x1], 0  ;;  %s549_s12 = smov 0   ;;  %s551_s13 = smov 0  }
   0x2   :  { %s553_s14 = smov 0   ;;  %s555_s15 = smov 0  }
   0x3 LB: > { %s570_s16 = sadd.s32 4294967295, %s524_s15   ;;  %s369_s17 = sadd.s32 4294967294, %s524_s15   ;;  %s524_s15 = sphi %s555_s15, %s675_s15   ;;  %s520_s14 = sphi %s553_s14, %s674_s14   ;;  %s516_s13 = sphi %s551_s13, %s673_s13   ;;  %s512_s12 = sphi %s549_s12, %s672_s12  }
   0x4   : > { %s574_s18 = sadd.s32 1, %s524_s15   ;;  %s91_s19 = sadd.s32 1, %s520_s14 }
   0x5   : > { %s88_s20 = ssub.s32 %s524_s15, %s574_s18  ;;  %p101_p0 = scmp.ne.s32.totalorder %s520_s14, %s516_s13 }
   0x6   : > { %p89_p1 = scmp.eq.s32.totalorder %s88_s20, 0  ;;  %p102_p2 = scmp.eq.s32.totalorder %s570_s16, 1 }
   0x7   : > { %p107_p3 = scmp.ne.s32.totalorder %s516_s13, %s512_s12  ;;  %p108_p4 = scmp.eq.s32.totalorder %s369_s17, 1 }
   0x8   : > { %s585_s21 = scalar_select %p89_p1, %s520_s14, %s91_s19  }
   0x9   : > { %p587_p5 = por %p102_p2, %p101_p0  ;;  %p591_p6 = por %p108_p4, %p107_p3 }
   0xa   : > { %p372_p7 = scmp.ge.s32.totalorder %s524_s15, 1  ;;  %p141_p8 = scmp.lt.s32.totalorder %s524_s15, 3 }
   0xc   : > { %p142_p9 = pnand %p372_p7, %p141_p8 }
   0xd   : > { %v176_v0 = vld [vmem:[%s667_s1] sm:$0xff] (!%p142_p9)  ;;  %v177_v1 = vld [vmem:[%s667_s1 + $0x8] sm:$0xff] (!%p142_p9)  ;;  %v178_v2 = vld [vmem:[%s667_s1 + $0x10] sm:$0xff] (!%p142_p9)  ;;  %s374_s30 = sshll.u32 (!%p142_p9), %s570_s16, 2  ;;  %vm187_vm0 = vcmask (!%p142_p9), 261120   ;;  %s162_s10 = sand.u32 (!%p142_p9), 1, %s516_s13  }
   0xe   : > { %145 = sbr.rel (%p142_p9) target bundleno = 258 (0x102), region = 32  ;;  %v409_v3 = vpack.c.bf16 (!%p142_p9), %v177_v1, %v176_v0  ;;  %v179_v4 = vld [vmem:[%s667_s1 + $0x18] sm:$0xff] (!%p142_p9)  ;;  %p166_p10 = scmp.lt.s32.totalorder (!%p142_p9), %s374_s30, 7  ;;  %v376_v10 = vld [vmem:[%s668_s2] ss:$0 sm:$0xff] (!%p142_p9) }
   0xf   : > { %v413_v5 = vpack.c.bf16 (!%p142_p9), %v179_v4, %v178_v2  ;;  %s373_s11 = sshll.u32 (!%p142_p9), %s162_s10, 5  ;;  %s386_s25 = sshll.u32 (!%p142_p9), %s570_s16, 9 }
  0x10   : > { %410 = vmatprep.subr.bf16.mxu0 (!%p142_p9), %v409_v3  ;;  %417 = vmatprep.subr.bf16.mxu1 (!%p142_p9), %v409_v3  ;;  %s164_s20 = scalar_lea.vmem (!%p142_p9), [#allocation2], %s373_s11  ;;  %s623_s28 = scalar_lea.hbm (!%p142_p9), %s669_s3, %s386_s25 }
  0x11   : > { %412 = vmatpush3.bf16.msra.mxu0 (!%p142_p9), %v409_v3  ;;  %419 = vmatpush3.bf16.msra.mxu1 (!%p142_p9), %v409_v3  ;;  %s307_s24 = sshll.u32 (!%p142_p9), %s164_s20, 4  ;;  %s625_s16 = scalar_lea.sflag (!%p142_p9), [#allocation3], %s162_s10  ;;  %s618_s24 = int_to_ptr.vmem [resolvable:$true] %s307_s24 }
  0x12   : > { %414 = vmatprep.subr.bf16.mxu0 (!%p142_p9), %v413_v5  ;;  %418 = vmatprep.subr.bf16.mxu1 (!%p142_p9), %v413_v5  ;;  %s462_s29 = scalar_lea.vmem (!%p142_p9), %s618_s24, 512 }
  0x13   : > { %p463_p11 = scmp.ne.s32.totalorder (!%p142_p9), %s618_s24, %s462_s29 }
  0x15   : > { %s677_s30 = smov (!%p166_p10, %s374_s30), 7  ;;  %416 = vmatpush3.bf16.msra.mxu0 %v413_v5  ;;  %420 = vmatpush3.bf16.msra.mxu1 %v413_v5  ;;  %p464_p12 = pnand %p463_p11, %p587_p5 }
  0x16   : > { %s375_s6 = sshll.u32 %s677_s30, 3  ;;  %s526_s30 = smov [#allocation2]  }
  0x17   : > { %s169_s9 = scalar_lea.vmem %s666_s0, %s375_s6  ;;  %p465_p13 = pneg %p464_p12 }
  0x18   : > { %v172_v6 = vld [vmem:[%s169_s9] sm:$0xff]  ;;  %v174_v7 = vld [vmem:[%s169_s9 + $0x10] sm:$0xff]  ;;  %v173_v8 = vld [vmem:[%s169_s9 + $0x8] sm:$0xff]  ;;  %s466_s4 = sshll.u32 %s526_s30, 4  ;;  %s467_s4 = int_to_ptr.vmem [resolvable:$false] %s466_s4 }
  0x19   : > { %v175_v9 = vld [vmem:[%s169_s9 + $0x18] sm:$0xff]  ;;  %403 = vmatprep.mubr.msk.f32.mxu0 %vm187_vm0, %v172_v6  ;;  %406 = vmatprep.mubr.msk.f32.mxu1 %vm187_vm0, %v174_v7  ;;  %s468_s5 = scalar_lea.vmem %s467_s4, 1024  ;;  %p469_p0 = scmp.lt.s32.totalorder %s618_s24, %s467_s4 }
  0x1a   : > { %404 = vmatmul.mubr.msk.f32.vlgmr.msra.gmra.mrb[0].mxu0 %vm187_vm0, %v173_v8  ;;  %407 = vmatmul.mubr.msk.f32.vlgmr.msra.gmra.mrb[0].mxu1 %vm187_vm0, %v175_v9  ;;  %p470_p1 = scmp.lt.s32.totalorder %s468_s5, %s462_s29 }
  0x1c   : > { %p471_p2 = por %p470_p1, %p469_p0 }
  0x1e   : > { %p472_p3 = pnand %p471_p2, %p465_p13 }
  0xed   : > { %v405_v11 = vpop.f32.mrb[0].mxu0  ;;  %v408_v12 = vpop.f32.mrb[0].mxu1 }
  0xee   : > { %v272_v13 = vadd.f32 %v405_v11, %v376_v10  ;;  %v282_v14 = vadd.f32 %v408_v12, %v376_v10  ;;  %v266_v15 = vpop.f32.mrb[1].mxu0  ;;  %v276_v16 = vpop.f32.mrb[1].mxu1 }
  0xef   : > { %v267_v17 = vadd.f32 %v376_v10, %v266_v15  ;;  %v277_v18 = vadd.f32 %v376_v10, %v276_v16 }
  0xf0   : > { %v286_v19 = vmax.f32 %v272_v13, 0.0  ;;  %v288_v20 = vmax.f32 %v282_v14, 0.0 }
  0xf1   : > { %v285_v21 = vmax.f32 %v267_v17, 0.0  ;;  %v287_v22 = vmax.f32 %v277_v18, 0.0 }
  0xf2   : > { %290 = vst [vmem:[%s164_s20 + $0x8] sm:$0xff] %v286_v19  ;;  %292 = vst [vmem:[%s164_s20 + $0x18] sm:$0xff] %v288_v20 }
  0xf3   : > { %289 = vst [vmem:[%s164_s20] sm:$0xff] %v285_v21  ;;  %291 = vst [vmem:[%s164_s20 + $0x10] sm:$0xff] %v287_v22 }
  0xf4   : > { %475 = shalt.err (!%p472_p3)
}
  0xf5   : > { %s476_s6 = scalar_lea.hbm %s623_s28, 512  ;;  %s480_s9 = scalar_lea.hbm %s669_s3, 1024 }
  0xf6   : > { %p477_p4 = scmp.ne.s32.totalorder %s623_s28, %s476_s6  ;;  %p481_p9 = scmp.lt.u32.totalorder %s623_s28, %s669_s3 }
  0xf7   : > { %p482_p10 = scmp.lt.u32.totalorder %s480_s9, %s476_s6  ;;  %p484_p12 = scmp.lt.u32.totalorder %s476_s6, %s623_s28 }
  0xf8   : > { %p478_p7 = pnand %p477_p4, %p587_p5 }
  0xf9   : > { %p483_p11 = por %p482_p10, %p481_p9 }
  0xfa   : > { %p479_p8 = pneg %p478_p7 }
  0xfb   : > { %p485_p13 = por %p484_p12, %p483_p11 }
  0xfd   : > { %p486_p0 = pnand %p485_p13, %p479_p8 }
  0xff   : > { %489 = shalt.err (!%p486_p0)
}
 0x100   : > { %s527_s17 = smov 128   ;;  %s528_s19 = smov 8  }
 0x101   : > { %421 = dma.vmem_to_hbm [thread:$0]  (%p587_p5), %s618_s24, 512, %s623_s28, %s625_s16, %s527_s17, %s527_s17, %s528_s19  }
 0x102 PF: > { %p427_p1 = scmp.ge.s32.totalorder %s524_s15, 2  ;;  %s322_s20 = sand.u32 1, %s512_s12  }
 0x103   : > { %s323_s25 = scalar_lea.sflag [#allocation3], %s322_s20 }
 0x104   : > { %p424_p2 = pnand %p427_p1, %p591_p6 }
 0x106   : > { %507 = dma.done.wait (!%p424_p2), %s323_s25, 512  }
 0x107   : > { %509 = vsyncadd (!%p424_p2), %s323_s25, 4294966784  ;;  %p13_p3 = scmp.ge.s32.totalorder %s574_s18, 4   ;;  %s672_s12 = smov %s516_s13 }
 0x108   : > { %s673_s13 = smov %s520_s14  ;;  %s674_s14 = smov %s585_s21 }
 0x109   : > { %s675_s15 = smov %s574_s18  ;;  %15 = sbr.rel (!%p13_p3) target bundleno = 3 (0x3), region = 67 }
 0x110   :  { %328 = vsyncpa [#allocation3], 1 }
 0x111   :  { %330 = vsyncpa [#allocation3 + $0x1], 1 }

</bundles_post_ra>
